<compile_context>
chip_gen: v7x
topology: tpu7x:2x2x1
jax: 0.10.0
libtpu: 0.0.40
codegen_flags: <defaults>
</compile_context>

<pallas_src>
import functools

import jax
import jax.numpy as jnp
from jax.experimental import pallas as pl
from jax.experimental.pallas import tpu as pltpu


def _round_up(n, m):
    return ((n + m - 1) // m) * m


# --------------------------------------------------------------------------
# One-time parameter re-layout (do this at parameter-load time, not per call).
# --------------------------------------------------------------------------
def prepare_hexanacci_coeffs(coeffs, degree):
    """Re-layout the PyTorch (I, O, degree+1) coeff tensor for the kernel.

    Returns (coeff_flat, bias):
      coeff_flat : (n_slabs * I, O) float32, slabs ordered [x, x^2, x^3, h_6..h_D]
                   (None if degree < 2)
      bias       : (1, O) float32  -- the h_1 == 1 contribution (zeros if degree == 0)
    """
    I, O, Dp1 = coeffs.shape
    assert Dp1 == degree + 1
    coeffs = coeffs.astype(jnp.float32)

    if degree >= 1:
        bias = jnp.sum(coeffs[:, :, 1], axis=0, keepdims=True)   # h_1 == 1
    else:
        bias = jnp.zeros((1, O), jnp.float32)

    slabs = []
    if degree >= 2:
        slabs.append(coeffs[:, :, 2])                  # basis: x
    if degree >= 3:
        c = coeffs[:, :, 3]
        if degree >= 4:
            c = c + coeffs[:, :, 4]                    # h_3 == h_4 == x^2 -> merge
        slabs.append(c)                                # basis: x^2
    if degree >= 5:
        slabs.append(coeffs[:, :, 5])                  # basis: x^3
    for n in range(6, degree + 1):
        slabs.append(coeffs[:, :, n])                  # basis: h_n (recurrence)

    coeff_flat = jnp.concatenate(slabs, axis=0) if slabs else None
    return coeff_flat, bias


# --------------------------------------------------------------------------
# Kernel
# --------------------------------------------------------------------------
def _hexanacci_kan_kernel(x_ref, coeff_ref, bias_ref, out_ref, *, degree, mxu_dtype):
    # x_ref:     (TB, I)            f32  (streamed per batch tile)
    # coeff_ref: (n_slabs * I, O)   mxu_dtype (resident)
    # bias_ref:  (1, O)             f32       (resident)
    # out_ref:   (TB, O)            f32

    # sigmoid + recurrence in f32 (VPU/EUP); only MXU operands are downcast.
    x = jax.nn.sigmoid(x_ref[...].astype(jnp.float32))

    bases = []
    if degree >= 2:
        bases.append(x)                                # h_2 = x
    x2 = x * x if degree >= 3 else None
    if degree >= 3:
        bases.append(x2)                               # h_3 = h_4 = x^2 (merged coeff)
    x3 = x2 * x if degree >= 5 else None
    if degree >= 5:
        bases.append(x3)                               # h_5 = x^3
    if degree >= 6:
        # Sliding 6-term window: live basis tiles capped at the recurrence width.
        # h_0 / h_1 are scalar constants (no zeros_like / ones_like tiles).
        window = [0.0, 1.0, x, x2, x2, x3]             # h_0 .. h_5
        for _n in range(6, degree + 1):
            h_n = (x * window[5] + window[4] + window[3]
                   + window[2] + window[1] + window[0])
            bases.append(h_n)
            window = window[1:] + [h_n]

    # One lane-dense slab -> ONE MXU matmul with K = n_slabs * I.
    basis_slab = jnp.concatenate(bases, axis=-1).astype(mxu_dtype)
    acc = jnp.dot(basis_slab, coeff_ref[...], preferred_element_type=jnp.float32)
    acc = acc + bias_ref[...]                          # h_1 contribution on the VPU
    out_ref[...] = acc.astype(out_ref.dtype)


# --------------------------------------------------------------------------
# Wrapper
# --------------------------------------------------------------------------
def hexanacci_kan_layer(x, coeff_flat, bias, degree, *,
                        mxu_dtype=jnp.float32, batch_tile=1024):
    """x: (B, I) f32; coeff_flat/bias from prepare_hexanacci_coeffs. Returns (B, O) f32.

    mxu_dtype=jnp.bfloat16 gives ~2x MXU rate on v6e/v7x (f32 accumulation kept).
    batch_tile is capped/padded to a multiple of 8 (f32 sublanes); large enough to
    amortize per-grid-step overhead yet tiny vs. v7x's 64 MiB VMEM (double-buffered
    x/out tiles at TB=1024, I=32, O=16 f32 are < 0.5 MiB total).
    """
    B, I = x.shape
    O = bias.shape[-1]

    if degree < 2:
        # degree 0 -> zeros; degree 1 -> pure bias broadcast. No matmul needed.
        return jnp.broadcast_to(bias, (B, O)).astype(jnp.float32)

    n_slabs = coeff_flat.shape[0] // I
    coeff_op = coeff_flat.astype(mxu_dtype)   # negligible one-off cast (n_slabs*I*O elems)
    bias_op = bias.astype(jnp.float32)

    # Batch tiling: TB multiple of 8; pad B up to a multiple of TB.
    TB = min(batch_tile, _round_up(B, 8))
    B_pad = _round_up(B, TB)
    x_p = x.astype(jnp.float32)
    if B_pad != B:
        x_p = jnp.pad(x_p, ((0, B_pad - B), (0, 0)))

    kernel = functools.partial(_hexanacci_kan_kernel, degree=degree,
                               mxu_dtype=mxu_dtype)
    out = pl.pallas_call(
        kernel,
        out_shape=jax.ShapeDtypeStruct((B_pad, O), jnp.float32),
        grid=(B_pad // TB,),
        in_specs=[
            pl.BlockSpec((TB, I), lambda i: (i, 0)),            # x: streamed per tile
            pl.BlockSpec((n_slabs * I, O), lambda i: (0, 0)),   # coeff slab: resident
            pl.BlockSpec((1, O), lambda i: (0, 0)),             # bias: resident
        ],
        out_specs=pl.BlockSpec((TB, O), lambda i: (i, 0)),
        compiler_params=pltpu.CompilerParams(
            dimension_semantics=("parallel",)),                 # v7x: shard batch over 2 TCs
    )(x_p, coeff_op, bias_op)
    return out[:B]


# --------------------------------------------------------------------------
# Pure-JAX reference mirroring the PyTorch module exactly.
# --------------------------------------------------------------------------
def _hexanacci(n, x):
    if n == 0:
        return jnp.zeros_like(x)
    elif n == 1:
        return jnp.ones_like(x)
    elif n in (2, 3):
        return x ** (n - 1)
    elif n in (4, 5):
        return x ** (n - 2)
    else:
        return (x * _hexanacci(n - 1, x) + _hexanacci(n - 2, x)
                + _hexanacci(n - 3, x) + _hexanacci(n - 4, x)
                + _hexanacci(n - 5, x) + _hexanacci(n - 6, x))


def hexanacci_kan_reference(x, coeffs, degree):
    s = jax.nn.sigmoid(x)
    basis = jnp.stack([_hexanacci(n, s) for n in range(degree + 1)], axis=-1)
    return jnp.einsum("bid,iod->bo", basis, coeffs)


if __name__ == "__main__":
    # Shapes consistent with the module: x is (batch, input_dim).
    batch, input_dim, output_dim, degree = 8, 32, 16, 7

    key = jax.random.PRNGKey(0)
    kx, kc = jax.random.split(key)
    x = jax.random.normal(kx, (batch, input_dim), dtype=jnp.float32)
    # nn.init.normal_(mean=0, std=1/(input_dim*(degree+1))) on (I, O, D+1)
    std = 1.0 / (input_dim * (degree + 1))
    coeffs = std * jax.random.normal(
        kc, (input_dim, output_dim, degree + 1), dtype=jnp.float32
    )

    # One-time parameter re-layout (would live at module init / load time).
    coeff_flat, bias = prepare_hexanacci_coeffs(coeffs, degree)

    # f32 MXU path: numerical parity with the module semantics.
    y = hexanacci_kan_layer(x, coeff_flat, bias, degree)
    y = jax.block_until_ready(y)

    y_ref = hexanacci_kan_reference(x, coeffs, degree)
    assert y.shape == (batch, output_dim)
    assert jnp.allclose(y, y_ref, atol=1e-5, rtol=1e-5), (
        float(jnp.max(jnp.abs(y - y_ref)))
    )

    # bf16-operand MXU path (the v6e/v7x-recommended configuration); f32 accumulate.
    y_bf16 = hexanacci_kan_layer(x, coeff_flat, bias, degree,
                                 mxu_dtype=jnp.bfloat16)
    y_bf16 = jax.block_until_ready(y_bf16)
    assert jnp.allclose(y_bf16, y_ref, atol=1e-2, rtol=5e-2), (
        float(jnp.max(jnp.abs(y_bf16 - y_ref)))
    )

    print("KERNEL_OK")
</pallas_src>

<mosaic_0001>
module attributes {stable_mosaic.version = 11 : i64} {
  func.func @_hexanacci_kan_kernel(%arg0: i32, %arg1: memref<8x32xf32, #tpu.memory_space<vmem>>, %arg2: memref<160x16xf32, #tpu.memory_space<vmem>>, %arg3: memref<1x16xf32, #tpu.memory_space<vmem>>, %arg4: memref<8x16xf32, #tpu.memory_space<vmem>>) attributes {dimension_semantics = [#tpu.dimension_semantics<parallel>], iteration_bounds = array<i64: 1>, scalar_prefetch = 0 : i64, scratch_operands = 0 : i64, tpu.core_type = #tpu.core_type<tc>, window_params = [{transform_indices = @transform_0, window_bounds = array<i64: 8, 32>}, {pipeline_mode = #tpu.pipeline_mode<synchronous>, transform_indices = @transform_1, window_bounds = array<i64: 160, 16>}, {pipeline_mode = #tpu.pipeline_mode<synchronous>, transform_indices = @transform_2, window_bounds = array<i64: 1, 16>}, {transform_indices = @transform_3, window_bounds = array<i64: 8, 16>}]} {
    %c0 = arith.constant 0 : index
    %c0_0 = arith.constant 0 : index
    %0 = vector.load %arg1[%c0, %c0_0] : memref<8x32xf32, #tpu.memory_space<vmem>>, vector<8x32xf32>
    %1 = arith.negf %0 : vector<8x32xf32>
    %2 = math.exp %1 : vector<8x32xf32>
    %cst = arith.constant 1.000000e+00 : f32
    %3 = vector.broadcast %cst : f32 to vector<8x32xf32>
    %4 = arith.addf %3, %2 : vector<8x32xf32>
    %5 = arith.divf %3, %4 : vector<8x32xf32>
    %6 = arith.mulf %5, %5 : vector<8x32xf32>
    %7 = arith.mulf %6, %5 : vector<8x32xf32>
    %8 = arith.mulf %5, %7 : vector<8x32xf32>
    %9 = arith.addf %8, %6 : vector<8x32xf32>
    %10 = arith.addf %9, %6 : vector<8x32xf32>
    %11 = arith.addf %10, %5 : vector<8x32xf32>
    %cst_1 = arith.constant 1.000000e+00 : f32
    %12 = vector.broadcast %cst_1 : f32 to vector<8x32xf32>
    %13 = arith.addf %11, %12 : vector<8x32xf32>
    %cst_2 = arith.constant 0.000000e+00 : f32
    %14 = vector.broadcast %cst_2 : f32 to vector<8x32xf32>
    %15 = arith.addf %13, %14 : vector<8x32xf32>
    %16 = arith.mulf %5, %15 : vector<8x32xf32>
    %17 = arith.addf %16, %7 : vector<8x32xf32>
    %18 = arith.addf %17, %6 : vector<8x32xf32>
    %19 = arith.addf %18, %6 : vector<8x32xf32>
    %20 = arith.addf %19, %5 : vector<8x32xf32>
    %cst_3 = arith.constant 1.000000e+00 : f32
    %21 = vector.broadcast %cst_3 : f32 to vector<8x32xf32>
    %22 = arith.addf %20, %21 : vector<8x32xf32>
    %23 = tpu.concatenate %5, %6, %7, %15, %22 in 1 : vector<8x32xf32>, vector<8x32xf32>, vector<8x32xf32>, vector<8x32xf32>, vector<8x32xf32> -> vector<8x160xf32>
    %c0_4 = arith.constant 0 : index
    %c0_5 = arith.constant 0 : index
    %24 = vector.load %arg2[%c0_4, %c0_5] : memref<160x16xf32, #tpu.memory_space<vmem>>, vector<160x16xf32>
    %cst_6 = arith.constant dense<0.000000e+00> : vector<8x16xf32>
    %25 = tpu.matmul %23, %24, %cst_6 {dimension_numbers = #tpu.dot_dimension_numbers<[1], [0], [0], [1], [0, 0, 1, 1], [], []>} : vector<8x160xf32>, vector<160x16xf32>, vector<8x16xf32> -> vector<8x16xf32>
    %c0_7 = arith.constant 0 : index
    %c0_8 = arith.constant 0 : index
    %26 = vector.load %arg3[%c0_7, %c0_8] : memref<1x16xf32, #tpu.memory_space<vmem>>, vector<1x16xf32>
    %27 = vector.broadcast %26 : vector<1x16xf32> to vector<8x16xf32>
    %28 = arith.addf %25, %27 : vector<8x16xf32>
    %c0_9 = arith.constant 0 : index
    %c0_10 = arith.constant 0 : index
    %29 = vector.load %arg4[%c0_9, %c0_10] : memref<8x16xf32, #tpu.memory_space<vmem>>, vector<8x16xf32>
    tpu.vector_store %arg4[%c0_9, %c0_10], %28 {strides = array<i32>} : memref<8x16xf32, #tpu.memory_space<vmem>>, vector<8x16xf32>,
    return
  }
  func.func @transform_0(%arg0: i32) -> (i32, i32) {
    %c0_i32 = arith.constant 0 : i32
    %c0_i32_0 = arith.constant 0 : i32
    return %arg0, %c0_i32 : i32, i32
  }
  func.func @transform_1(%arg0: i32) -> (i32, i32) {
    %c0_i32 = arith.constant 0 : i32
    %c0_i32_0 = arith.constant 0 : i32
    %c0_i32_1 = arith.constant 0 : i32
    return %c0_i32, %c0_i32_0 : i32, i32
  }
  func.func @transform_2(%arg0: i32) -> (i32, i32) {
    %c0_i32 = arith.constant 0 : i32
    %c0_i32_0 = arith.constant 0 : i32
    %c0_i32_1 = arith.constant 0 : i32
    return %c0_i32, %c0_i32_0 : i32, i32
  }
  func.func @transform_3(%arg0: i32) -> (i32, i32) {
    %c0_i32 = arith.constant 0 : i32
    %c0_i32_0 = arith.constant 0 : i32
    return %arg0, %c0_i32 : i32, i32
  }
}

</mosaic_0001>

<bundles_post_ra>
// kernel: tpu_custom_call.1
= control target key start
LH: loop header
LB: loop body
LE: loop exit
PB: predicated region body
PF: predicated region fallthrough
CT: control target
= control target key end

     0   :  { %v236_v4 = vmov 0.0|0.0   ;;  %s339_s0 = inlined_call_operand.vmem [shape: f32[8,32], index: 0, kind: input, shape index: {}]   ;;  %s340_s1 = inlined_call_operand.vmem [shape: f32[160,16], index: 1, kind: input, shape index: {}]   ;;  %s341_s2 = inlined_call_operand.vmem [shape: f32[1,16], index: 2, kind: input, shape index: {}]   ;;  %s342_s3 = inlined_call_operand.hbm [shape: f32[8,16], index: 3, kind: output, shape index: {}]  }
   0x1   :  { %v15_v0 = vld [vmem:[%s339_s0] sm:$0xff]  ;;  %v55_v2 = vld [vmem:[%s340_s1 + $0x8] sm:$0xff]  ;;  %173 = vmatprep.subr.bf16.mxu0 %v236_v4  ;;  %v56_v6 = vld [vmem:[%s340_s1 + $0x10] sm:$0xff] }
   0x2   :  { %v54_v1 = vld [vmem:[%s340_s1] sm:$0xff]  ;;  %v170_v3 = vmul.f32 -1.442695, %v15_v0  ;;  %v57_v7 = vld [vmem:[%s340_s1 + $0x18] sm:$0xff]  ;;  %v59_v10 = vld [vmem:[%s340_s1 + $0x28] sm:$0xff] }
   0x3   :  { %v174_v5 = vpack.c.bf16 %v55_v2, %v54_v1  ;;  %v177_v8 = vpack.c.bf16 %v57_v7, %v56_v6  ;;  %v58_v9 = vld [vmem:[%s340_s1 + $0x20] sm:$0xff] }
   0x4   :  { %208 = vpow2.f32 %v170_v3 }
   0x5   :  { %175 = vmatpush1.bf16.msra.mxu0 %v174_v5 }
   0x6   :  { %176 = vmatprep.subr.bf16.mxu0 %v236_v4 }
   0x7   :  { %8 = vsyncpa [#allocation3], 0  ;;  %v180_v11 = vpack.c.bf16 %v59_v10, %v58_v9  ;;  %v60_v12 = vld [vmem:[%s340_s1 + $0x30] sm:$0xff]  ;;  %v61_v13 = vld [vmem:[%s340_s1 + $0x38] sm:$0xff]  ;;  %s237_s0 = smov 32   ;;  %s238_s26 = smov 64  }
   0x8   :  { %v183_v14 = vpack.c.bf16 %v61_v13, %v60_v12  ;;  %v62_v15 = vld [vmem:[%s340_s1 + $0x40] sm:$0xff]  ;;  %v63_v16 = vld [vmem:[%s340_s1 + $0x48] sm:$0xff]  ;;  %v64_v20 = vld [vmem:[%s340_s1 + $0x50] sm:$0xff]  ;;  %s239_s27 = smov 96   ;;  %vm48_vm0 = vcmask 261120   ;;  %vm50_vm1 = vcmask 523264  }
   0x9   :  { %178 = vmatpush1.bf16.msra.mxu0 %v177_v8  ;;  %v186_v19 = vpack.c.bf16 %v63_v16, %v62_v15  ;;  %v65_v21 = vld [vmem:[%s340_s1 + $0x58] sm:$0xff]  ;;  %v66_v23 = vld [vmem:[%s340_s1 + $0x60] sm:$0xff]  ;;  %v67_v24 = vld [vmem:[%s340_s1 + $0x68] sm:$0xff]  ;;  %vm52_vm2 = vcmask 785408   ;;  %s240_s29 = smov [#allocation2]   ;;  %vm154_vm3 = vcmask 130048  }
   0xa   :  { %179 = vmatprep.subr.bf16.mxu0 %v236_v4  ;;  %v189_v22 = vpack.c.bf16 %v65_v21, %v64_v20  ;;  %v192_v25 = vpack.c.bf16 %v67_v24, %v66_v23  ;;  %v68_v26 = vld [vmem:[%s340_s1 + $0x70] sm:$0xff]  ;;  %v69_v27 = vld [vmem:[%s340_s1 + $0x78] sm:$0xff]  ;;  %v70_v31 = vld [vmem:[%s340_s1 + $0x80] sm:$0xff]  ;;  %s162_s30 = sshll.u32 %s240_s29, 4  ;;  %s163_s30 = int_to_ptr.vmem [resolvable:$true] %s162_s30 }
   0xb   :  { %v195_v30 = vpack.c.bf16 %v69_v27, %v68_v26  ;;  %v71_v32 = vld [vmem:[%s340_s1 + $0x88] sm:$0xff]  ;;  %v72_v36 = vld [vmem:[%s340_s1 + $0x90] sm:$0xff]  ;;  %v73_v37 = vld [vmem:[%s340_s1 + $0x98] sm:$0xff]  ;;  %s212_s4 = scalar_lea.vmem %s163_s30, 128  ;;  %p217_p1 = scmp.lt.s32.totalorder %s163_s30, %s163_s30 }
   0xc   :  { %v198_v35 = vpack.c.bf16 %v71_v32, %v70_v31  ;;  %v201_v40 = vpack.c.bf16 %v73_v37, %v72_v36  ;;  %v171_v55 = vld [vmem:[%s341_s2] ss:$0 sm:$0xff]  ;;  %p213_p0 = scmp.ne.s32.totalorder %s163_s30, %s212_s4  ;;  %p218_p2 = scmp.lt.s32.totalorder %s212_s4, %s212_s4 }
   0xd   :  { %181 = vmatpush1.bf16.msra.mxu0 %v180_v11 }
   0xe   :  { %182 = vmatprep.subr.bf16.mxu0 %v236_v4  ;;  %v209_v17 = vpop.eup %208  ;;  %p219_p3 = por %p218_p2, %p217_p1 }
   0xf   :  { %v19_v18 = vadd.f32 1.0, %v209_v17 }
  0x10   :  { %p220_p4 = pnand %p219_p3, %p213_p0 }
  0x11   :  { %184 = vmatpush1.bf16.msra.mxu0 %v183_v14  ;;  %210 = vrcp.f32 %v19_v18 }
  0x12   :  { %185 = vmatprep.subr.bf16.mxu0 %v236_v4 }
  0x15   :  { %187 = vmatpush1.bf16.msra.mxu0 %v186_v19 }
  0x16   :  { %188 = vmatprep.subr.bf16.mxu0 %v236_v4 }
  0x19   :  { %190 = vmatpush1.bf16.msra.mxu0 %v189_v22 }
  0x1a   :  { %191 = vmatprep.subr.bf16.mxu0 %v236_v4 }
  0x1b   :  { %v211_v28 = vpop.eup %210 }
  0x1c   :  { %v22_v29 = vmul.f32 %v211_v28, %v211_v28 }
  0x1d   :  { %193 = vmatpush1.bf16.msra.mxu0 %v192_v25 }
  0x1e   :  { %194 = vmatprep.subr.bf16.mxu0 %v236_v4  ;;  %37 = vrot.lane.b32.xlu0 %v22_v29, %s237_s0  ;;  %v23_v33 = vmul.f32 %v211_v28, %v22_v29 }
  0x20   :  { %v24_v34 = vmul.f32 %v211_v28, %v23_v33 }
  0x21   :  { %196 = vmatpush1.bf16.msra.mxu0 %v195_v30 }
  0x22   :  { %197 = vmatprep.subr.bf16.mxu0 %v236_v4  ;;  %41 = vrot.lane.b32.xlu0 %v23_v33, %s238_s26  ;;  %v25_v38 = vadd.f32 %v24_v34, %v22_v29 }
  0x24   :  { %v26_v39 = vadd.f32 %v25_v38, %v22_v29 }
  0x25   :  { %199 = vmatpush1.bf16.msra.mxu0 %v198_v35 }
  0x26   :  { %200 = vmatprep.subr.bf16.mxu0 %v236_v4  ;;  %v27_v41 = vadd.f32 %v211_v28, %v26_v39 }
  0x28   :  { %v28_v42 = vadd.f32 1.0, %v27_v41 }
  0x29   :  { %202 = vmatpush1.bf16.msra.mxu0 %v201_v40 }
  0x2a   :  { %45 = vrot.lane.b32.xlu1 %v28_v42, %s239_s27  ;;  %v30_v43 = vmul.f32 %v211_v28, %v28_v42 }
  0x2c   :  { %v31_v44 = vadd.f32 %v30_v43, %v23_v33 }
  0x2e   :  { %v32_v45 = vadd.f32 %v31_v44, %v22_v29 }
  0x30   :  { %v33_v46 = vadd.f32 %v32_v45, %v22_v29 }
  0x32   :  { %v34_v47 = vadd.f32 %v211_v28, %v33_v46 }
  0x34   :  { %v35_v48 = vadd.f32 1.0, %v34_v47 }
  0x36   :  { %172 = vmatprep.mubr.msk.f32.mxu0 %vm48_vm0, %v35_v48 }
  0x90   :  { %v38_v49 = vpop.permute.xlu0 %37 }
  0x91   :  { %v49_v51 = vsel %vm48_vm0, %v211_v28, %v38_v49 }
  0x94   :  { %v42_v50 = vpop.permute.xlu0 %41 }
  0x95   :  { %v51_v53 = vsel %vm50_vm1, %v49_v51, %v42_v50 }
  0x9c   :  { %v46_v52 = vpop.permute.xlu1 %45 }
  0x9d   :  { %v53_v54 = vsel %vm52_vm2, %v51_v53, %v46_v52 }
  0x9e   :  { %149 = vmatmul.mubr.f32.vlgmr.msra.gmra.mrb[0].mxu0 %v53_v54 }
 0x171   :  { %v150_v56 = vpop.f32.mrb[0].mxu0 }
 0x172   :  { %v151_v57 = vadd.f32 %v171_v55, %v150_v56  ;;  %v152_v58 = vpop.f32.mrb[1].mxu0 }
 0x174   :  { %155 = vst.msk [vmem:[#allocation2] sm:$0xff] %vm154_vm3, %v151_v57 }
 0x175   :  { %223 = shalt.err (!%p220_p4)
}
 0x176   :  { %s224_s7 = scalar_lea.hbm %s342_s3, 128 }
 0x177   :  { %p225_p5 = scmp.ne.s32.totalorder %s342_s3, %s224_s7  ;;  %p228_p6 = scmp.lt.u32.totalorder %s224_s7, %s342_s3 }
 0x179   :  { %p230_p7 = pnand %p228_p6, %p225_p5 }
 0x17b   :  { %233 = shalt.err (!%p230_p7)
}
 0x17c   :  { %165 = dma.vmem_to_hbm [thread:$0]  %s163_s30, 128, %s342_s3, [#allocation3]  }
 0x17d   :  { %234 = dma.done.wait [#allocation3], 128  }
 0x17e   :  { %235 = vsyncadd [#allocation3], 4294967168 }
 0x17f   :  { %169 = vsyncpa [#allocation3], 1 }

</bundles_post_ra>
